<compile_context>
chip_gen: v7x
topology: tpu7x:2x2x1
jax: 0.10.0
libtpu: 0.0.40
codegen_flags: <defaults>
</compile_context>

<pallas_src>
import jax
import jax.numpy as jnp
from jax.experimental import pallas as pl
from jax.experimental.pallas import tpu as pltpu


def _round_up(x, m):
    return ((x + m - 1) // m) * m


def _pick_tile(padded, candidates=(512, 256, 128)):
    """Largest candidate tile that divides `padded` (padded is a multiple of 128)."""
    for c in candidates:
        if padded % c == 0:
            return min(c, padded)
    return padded  # unreachable: padded is always a multiple of 128


def _linear_kernel(x_ref, w_ref, b_ref, o_ref, acc_ref):
    """One (tb, tn) output tile; accumulates over the K grid axis."""
    k = pl.program_id(2)

    @pl.when(k == 0)
    def _init():
        # Fold the bias add into accumulator initialization.
        acc_ref[...] = jnp.broadcast_to(
            b_ref[...].astype(jnp.float32), acc_ref.shape)

    acc_ref[...] += jnp.dot(
        x_ref[...], w_ref[...], preferred_element_type=jnp.float32)

    @pl.when(k == pl.num_programs(2) - 1)
    def _store():
        o_ref[...] = acc_ref[...].astype(o_ref.dtype)


def decoder_head_forward(x, w_t, b, *, batch_tile=None, compute_dtype=None,
                         vmem_limit_bytes=None, force_pallas=False):
    """Pallas forward for Decoder_Head (layers=1).

    Args:
      x:   (B, in_dim)
      w_t: (in_dim, action_num) — PyTorch Linear weight, pre-transposed
      b:   (action_num,) or (1, action_num)
    Returns:
      (logits (B, action_num), anti_t == 0)
    """
    B, in_dim = x.shape
    in_dim_w, action_num = w_t.shape
    assert in_dim == in_dim_w
    b2d = jnp.asarray(b).reshape(1, action_num)
    out_dtype = x.dtype

    # Tiny problems: one fused XLA dot+add beats any pallas_call (grid/DMA
    # setup overhead dominates).  Guard the Pallas path behind a minimum size.
    tiny = (B * in_dim * action_num) < (1 << 18) or B < 16
    if tiny and not force_pallas:
        return (x @ w_t + b2d).astype(out_dtype), 0

    # ---- Pad to TPU-friendly shapes (zero padding is exact) -----------------
    N_pad = _round_up(action_num, 128)   # lane-dense output / full MXU columns
    K_pad = _round_up(in_dim, 128)       # contraction dim feeds MXU fully
    tn = _pick_tile(N_pad)
    tk = _pick_tile(K_pad)

    # Batch tile: big enough to amortize per-step overhead, small enough to
    # stay well under VMEM; prefer >=2 parallel grid steps (v7x has 2 TCs).
    if batch_tile is None:
        tb = min(512, _round_up(B, 8))
        if (pl.cdiv(B, tb) * (N_pad // tn)) < 2 and tb >= 16:
            tb = _round_up(tb // 2, 8)
    else:
        tb = _round_up(batch_tile, 8)
    B_pad = _round_up(B, tb)

    compute_dtype = compute_dtype or x.dtype
    x_p = jnp.zeros((B_pad, K_pad), compute_dtype).at[:B, :in_dim].set(
        x.astype(compute_dtype))
    w_p = jnp.zeros((K_pad, N_pad), compute_dtype).at[:in_dim, :action_num].set(
        w_t.astype(compute_dtype))
    b_p = jnp.zeros((1, N_pad), jnp.float32).at[:, :action_num].set(
        b2d.astype(jnp.float32))

    grid = (B_pad // tb, N_pad // tn, K_pad // tk)

    # Explicit VMEM budget: double-buffered x/w/bias/out tiles + f32 accumulator,
    # with 2x headroom (stays inside v7x's 64 MiB physical VMEM).
    in_item = jnp.dtype(compute_dtype).itemsize
    out_item = jnp.dtype(out_dtype).itemsize
    est = (2 * (tb * tk + tk * tn) * in_item   # x / W double buffers
           + 2 * tn * 4                        # bias double buffer
           + 2 * tb * tn * out_item            # output double buffer
           + tb * tn * 4)                      # accumulator scratch
    if vmem_limit_bytes is None:
        vmem_limit_bytes = min(96 * 1024 * 1024, max(4 * 1024 * 1024, 2 * est))

    logits_p = pl.pallas_call(
        _linear_kernel,
        out_shape=jax.ShapeDtypeStruct((B_pad, N_pad), out_dtype),
        grid_spec=pltpu.PrefetchScalarGridSpec(
            num_scalar_prefetch=0,
            grid=grid,
            in_specs=[
                pl.BlockSpec((tb, tk), lambda i, j, k: (i, k)),   # x tile
                pl.BlockSpec((tk, tn), lambda i, j, k: (k, j)),   # W^T tile
                pl.BlockSpec((1, tn), lambda i, j, k: (0, j)),    # bias tile
            ],
            out_specs=pl.BlockSpec((tb, tn), lambda i, j, k: (i, j)),
            scratch_shapes=[pltpu.VMEM((tb, tn), jnp.float32)],
        ),
        compiler_params=pltpu.CompilerParams(
            dimension_semantics=("parallel", "parallel", "arbitrary"),
            vmem_limit_bytes=int(vmem_limit_bytes),
        ),
    )(x_p, w_p, b_p)

    logits = logits_p[:B, :action_num]
    anti_t = 0
    return logits, anti_t


# TODO(synk): layers==2 branch (anti_fc1 -> ReLU -> Dropout -> anti_fc2) is not
# implemented: the reference PyTorch forward raises NameError (`anti_t` unset)
# on that path, so only the well-defined layers==1 path is translated.


if __name__ == "__main__":
    key = jax.random.PRNGKey(0)
    kx, kw, kb, kx2, kw2, kb2 = jax.random.split(key, 6)

    # --- Pallas path: non-aligned shapes exercise padding / tiling -----------
    B, in_dim, action_num = 200, 384, 10
    x = jax.random.normal(kx, (B, in_dim), dtype=jnp.float32)
    # nn.Linear(in_dim, action_num): weight (action_num, in_dim), bias (action_num,)
    w = jax.random.normal(kw, (action_num, in_dim), dtype=jnp.float32) * 0.02
    b_vec = jax.random.normal(kb, (action_num,), dtype=jnp.float32) * 0.02
    w_t = jnp.transpose(w)  # (in_dim, action_num)

    logits, anti_t = decoder_head_forward(x, w_t, b_vec, force_pallas=True)
    logits = jax.block_until_ready(logits)

    ref = x @ w_t + b_vec[None, :]
    assert anti_t == 0
    assert logits.shape == (B, action_num)
    assert jnp.allclose(logits, ref, atol=1e-4, rtol=1e-4), \
        float(jnp.max(jnp.abs(logits - ref)))

    # --- Tiny-shape fast path (plain XLA dot; Pallas would be pure overhead) -
    B2, in2, a2 = 8, 32, 16
    x2 = jax.random.normal(kx2, (B2, in2), dtype=jnp.float32)
    w2 = jax.random.normal(kw2, (a2, in2), dtype=jnp.float32) * 0.02
    b2 = jax.random.normal(kb2, (a2,), dtype=jnp.float32) * 0.02
    logits2, anti_t2 = decoder_head_forward(x2, jnp.transpose(w2), b2)
    logits2 = jax.block_until_ready(logits2)
    ref2 = x2 @ jnp.transpose(w2) + b2[None, :]
    assert anti_t2 == 0
    assert jnp.allclose(logits2, ref2, atol=1e-5, rtol=1e-5)

    print("KERNEL_OK")
</pallas_src>

<mosaic_0001>
module attributes {stable_mosaic.version = 11 : i64} {
  func.func @_linear_kernel(%arg0: i32, %arg1: i32, %arg2: i32, %arg3: memref<104x128xf32, #tpu.memory_space<vmem>>, %arg4: memref<128x128xf32, #tpu.memory_space<vmem>>, %arg5: memref<1x128xf32, #tpu.memory_space<vmem>>, %arg6: memref<104x128xf32, #tpu.memory_space<vmem>>, %arg7: memref<104x128xf32, #tpu.memory_space<vmem>>) attributes {dimension_semantics = [#tpu.dimension_semantics<parallel>, #tpu.dimension_semantics<parallel>, #tpu.dimension_semantics<arbitrary>], iteration_bounds = array<i64: 2, 1, 3>, scalar_prefetch = 0 : i64, scratch_operands = 1 : i64, tpu.core_type = #tpu.core_type<tc>, window_params = [{transform_indices = @transform_0, window_bounds = array<i64: 104, 128>}, {transform_indices = @transform_1, window_bounds = array<i64: 128, 128>}, {transform_indices = @transform_2, window_bounds = array<i64: 1, 128>}, {transform_indices = @transform_3, window_bounds = array<i64: 104, 128>}]} {
    %c0_i32 = arith.constant 0 : i32
    %0 = arith.cmpi eq, %arg2, %c0_i32 : i32
    %1 = arith.extui %0 : i1 to i32
    %c0_i32_0 = arith.constant 0 : i32
    %2 = arith.cmpi ne, %1, %c0_i32_0 : i32
    scf.if %2 {
      %c0_9 = arith.constant 0 : index
      %c0_10 = arith.constant 0 : index
      %12 = vector.load %arg5[%c0_9, %c0_10] : memref<1x128xf32, #tpu.memory_space<vmem>>, vector<1x128xf32>
      %13 = vector.shape_cast %12 : vector<1x128xf32> to vector<1x128xf32>
      %14 = vector.broadcast %13 : vector<1x128xf32> to vector<104x128xf32>
      %c0_11 = arith.constant 0 : index
      %c0_12 = arith.constant 0 : index
      %15 = vector.load %arg7[%c0_11, %c0_12] : memref<104x128xf32, #tpu.memory_space<vmem>>, vector<104x128xf32>
      tpu.vector_store %arg7[%c0_11, %c0_12], %14 {strides = array<i32>} : memref<104x128xf32, #tpu.memory_space<vmem>>, vector<104x128xf32>,
    } else {
    }
    %c0 = arith.constant 0 : index
    %c0_1 = arith.constant 0 : index
    %3 = vector.load %arg7[%c0, %c0_1] : memref<104x128xf32, #tpu.memory_space<vmem>>, vector<104x128xf32>
    %c0_2 = arith.constant 0 : index
    %c0_3 = arith.constant 0 : index
    %4 = vector.load %arg3[%c0_2, %c0_3] : memref<104x128xf32, #tpu.memory_space<vmem>>, vector<104x128xf32>
    %c0_4 = arith.constant 0 : index
    %c0_5 = arith.constant 0 : index
    %5 = vector.load %arg4[%c0_4, %c0_5] : memref<128x128xf32, #tpu.memory_space<vmem>>, vector<128x128xf32>
    %cst = arith.constant dense<0.000000e+00> : vector<104x128xf32>
    %6 = tpu.matmul %4, %5, %cst {dimension_numbers = #tpu.dot_dimension_numbers<[1], [0], [0], [1], [0, 0, 1, 1], [], []>} : vector<104x128xf32>, vector<128x128xf32>, vector<104x128xf32> -> vector<104x128xf32>
    %7 = arith.addf %3, %6 : vector<104x128xf32>
    %c0_6 = arith.constant 0 : index
    %c0_7 = arith.constant 0 : index
    %8 = vector.load %arg7[%c0_6, %c0_7] : memref<104x128xf32, #tpu.memory_space<vmem>>, vector<104x128xf32>
    tpu.vector_store %arg7[%c0_6, %c0_7], %7 {strides = array<i32>} : memref<104x128xf32, #tpu.memory_space<vmem>>, vector<104x128xf32>,
    %c2_i32 = arith.constant 2 : i32
    %9 = arith.cmpi eq, %arg2, %c2_i32 : i32
    %10 = arith.extui %9 : i1 to i32
    %c0_i32_8 = arith.constant 0 : i32
    %11 = arith.cmpi ne, %10, %c0_i32_8 : i32
    scf.if %11 {
      %c0_9 = arith.constant 0 : index
      %c0_10 = arith.constant 0 : index
      %12 = vector.load %arg7[%c0_9, %c0_10] : memref<104x128xf32, #tpu.memory_space<vmem>>, vector<104x128xf32>
      %c0_11 = arith.constant 0 : index
      %c0_12 = arith.constant 0 : index
      %13 = vector.load %arg6[%c0_11, %c0_12] : memref<104x128xf32, #tpu.memory_space<vmem>>, vector<104x128xf32>
      tpu.vector_store %arg6[%c0_11, %c0_12], %12 {strides = array<i32>} : memref<104x128xf32, #tpu.memory_space<vmem>>, vector<104x128xf32>,
    } else {
    }
    return
  }
  func.func @transform_0(%arg0: i32, %arg1: i32, %arg2: i32) -> (i32, i32) {
    %c0_i32 = arith.constant 0 : i32
    return %arg0, %arg2 : i32, i32
  }
  func.func @transform_1(%arg0: i32, %arg1: i32, %arg2: i32) -> (i32, i32) {
    %c0_i32 = arith.constant 0 : i32
    return %arg2, %arg1 : i32, i32
  }
  func.func @transform_2(%arg0: i32, %arg1: i32, %arg2: i32) -> (i32, i32) {
    %c0_i32 = arith.constant 0 : i32
    %c0_i32_0 = arith.constant 0 : i32
    return %c0_i32, %arg1 : i32, i32
  }
  func.func @transform_3(%arg0: i32, %arg1: i32, %arg2: i32) -> (i32, i32) {
    %c0_i32 = arith.constant 0 : i32
    return %arg0, %arg1 : i32, i32
  }
}

</mosaic_0001>

<bundles_post_ra>
// kernel: tpu_custom_call.1
= control target key start
LH: loop header
LB: loop body
LE: loop exit
PB: predicated region body
PF: predicated region fallthrough
CT: control target
= control target key end

     0   :  { %s1644_s0 = inlined_call_operand.hbm [shape: f32[208,384], index: 0, kind: input, shape index: {}]   ;;  %s1645_s1 = inlined_call_operand.hbm [shape: f32[384,128], index: 1, kind: input, shape index: {}]   ;;  %s1646_s2 = inlined_call_operand.vmem [shape: f32[1,128], index: 2, kind: input, shape index: {}]   ;;  %s1647_s3 = inlined_call_operand.hbm [shape: f32[208,128], index: 3, kind: output, shape index: {}]  }
   0x1   :  { %1658 = sst [smem:[#allocation16_spill]] %s1644_s0 }
   0x2   :  { %1659 = sst [smem:[#allocation17_spill]] %s1647_s3 }
   0x3   :  { %8 = vsyncpa [#allocation4], 0 }
   0x4   :  { %10 = vsyncpa [#allocation4 + $0x1], 0 }
   0x5   :  { %11 = vsyncpa [#allocation7], 0 }
   0x6   :  { %13 = vsyncpa [#allocation7 + $0x1], 0 }
   0x7   :  { %14 = vsyncpa [#allocation5], 0 }
   0x8   :  { %16 = vsyncpa [#allocation5 + $0x1], 0  ;;  %s1215_s12 = smov 0   ;;  %s1217_s13 = smov 0  }
   0x9   :  { %s1219_s14 = smov 0   ;;  %s1221_s15 = smov 0  }
   0xa   :  { %s1223_s16 = smov 0   ;;  %s1225_s17 = smov 0  }
   0xb   :  { %s1227_s18 = smov 0   ;;  %s1229_s19 = smov 0  }
   0xc   :  { %s1231_s20 = smov 0   ;;  %s1233_s21 = smov 0  }
   0xd   :  { %s1235_s22 = smov 0   ;;  %s1237_s23 = smov 0  }
   0xe   :  { %s1239_s24 = smov 0   ;;  %s1241_s25 = smov 0  }
   0xf LB: > { %1660 = sst [smem:[#allocation12_spill]] %s1170_s22  ;;  %s34_s26 = sadd.s32 1, %s1174_s23  ;;  %s1182_s25 = sphi %s1241_s25, %s22_s25   ;;  %s1178_s24 = sphi %s1239_s24, %s1701_s24   ;;  %s1174_s23 = sphi %s1237_s23, %s1700_s23   ;;  %s1170_s22 = sphi %s1235_s22, %s1699_s22   ;;  %s1166_s21 = sphi %s1233_s21, %s1698_s21   ;;  %s1162_s20 = sphi %s1231_s20, %s1697_s20   ;;  %s1158_s19 = sphi %s1229_s19, %s1696_s19   ;;  %s1154_s18 = sphi %s1227_s18, %s1695_s18   ;;  %s1150_s17 = sphi %s1225_s17, %s1694_s17   ;;  %s1146_s16 = sphi %s1223_s16, %s1693_s16   ;;  %s1142_s15 = sphi %s1221_s15, %s1692_s15   ;;  %s1138_s14 = sphi %s1219_s14, %s1691_s14   ;;  %s1134_s13 = sphi %s1217_s13, %s1690_s13   ;;  %s1130_s12 = sphi %s1215_s12, %s1689_s12  }
  0x10   : > { %s41_s27 = sadd.s32 1, %s1178_s24  ;;  %p35_p0 = scmp.ge.s32.totalorder %s34_s26, 3 }
  0x11   : > { %s50_s28 = sadd.s32 1, %s1162_s20  ;;  %p57_p1 = scmp.ne.s32.totalorder %s1162_s20, %s1158_s19 }
  0x12   : > { %p1652_p2 = scmp.eq.s32.totalorder %s1182_s25, 0  ;;  %s1703_s26 = smov (%p35_p0, %s34_s26), 0 }
  0x13   : > { %1661 = sst [smem:[#allocation13_spill]] %s1703_s26  ;;  %s1705_s27 = smov (!%p35_p0, %s41_s27), %s1178_s24 }
  0x14   : > { %s1296_s29 = ssub.s32 %s1174_s23, %s1703_s26  ;;  %p1300_p3 = por %p1652_p2, %p57_p1 }
  0x15   : > { %p43_p4 = scmp.ge.s32.totalorder %s1705_s27, 2  ;;  %p63_p5 = scmp.ne.s32.totalorder %s1158_s19, %s1154_s18 }
  0x16   : > { %s132_s4 = sadd.s32 1, %s1138_s14  ;;  %p1651_p7 = scmp.lt.s32.totalorder %s1182_s25, 6 }
  0x17   : > { %s1707_s27 = smov (%p43_p4, %s1705_s27), 0  ;;  %s175_s6 = sand.u32 1, %s1162_s20  }
  0x18   : > { %1663 = sst [smem:[#allocation14_spill]] %s1707_s27  ;;  %s45_s5 = ssub.s32 %s1178_s24, %s1707_s27 }
  0x19   : > { %s47_s7 = sor.u32 %s1296_s29, %s45_s5  ;;  %p130_p8 = scmp.eq.s32.totalorder %s45_s5, 0 }
  0x1a   : > { %p48_p9 = scmp.eq.s32.totalorder %s47_s7, 0  ;;  %s828_s10 = smul.u32 104, %s175_s6 }
  0x1b   : > { %s1316_s8 = scalar_select %p130_p8, %s1138_s14, %s132_s4  }
  0x1c   : > { %s1319_s9 = scalar_select %p48_p9, %s1162_s20, %s50_s28  }
  0x1d   : > { %p1325_p10 = pnand %p1651_p7, %p1300_p3  ;;  %s850_s26 = smul.u32 39, %s1178_s24 }
  0x1e   : > { %1664 = sst [smem:[#allocation15_spill]] %s1319_s9  ;;  %s179_s3 = scalar_lea.vmem [#allocation3], %s828_s10 }
  0x1f   : > { %s188_s27 = sshll.u32 %s179_s3, 4  ;;  %s185_s22 = sadd.s32 %s1174_s23, %s850_s26  ;;  %s1331_s27 = int_to_ptr.vmem [resolvable:$true] %s188_s27 }
  0x20   : > { %s674_s5 = sshll.u32 %s185_s22, 7  ;;  %s1666_s0 = sld [smem:[#allocation16_spill]] }
  0x21   : > { %s1338_s30 = scalar_lea.sflag [#allocation4], %s175_s6  ;;  %p974_p12 = pneg %p1325_p10 }
  0x26   : > { %s1336_s28 = scalar_lea.hbm %s1666_s0, %s674_s5  ;;  %s977_s26 = scalar_lea.hbm %s1666_s0, 9984 }
  0x27   : > { %s972_s9 = scalar_lea.hbm %s1336_s28, 1664  ;;  %p978_p1 = scmp.lt.u32.totalorder %s1336_s28, %s1666_s0 }
  0x28   : > { %p973_p11 = scmp.ne.s32.totalorder %s1336_s28, %s972_s9  ;;  %p979_p3 = scmp.lt.u32.totalorder %s977_s26, %s972_s9 }
  0x29   : > { %p981_p8 = scmp.lt.u32.totalorder %s972_s9, %s1336_s28 }
  0x2a   : > { %p975_p13 = pnand %p974_p12, %p973_p11  ;;  %p980_p4 = por %p979_p3, %p978_p1 }
  0x2c   : > { %p976_p0 = pneg %p975_p13  ;;  %p982_p9 = por %p981_p8, %p980_p4 }
  0x2e   : > { %p983_p7 = pnand %p982_p9, %p976_p0 }
  0x30   : > { %986 = shalt.err (!%p983_p7)
}
  0x31   : > { %s987_s6 = scalar_lea.vmem %s1331_s27, 1664  ;;  %s1184_s4 = smov [#allocation3]  }
  0x32   : > { %p988_p11 = scmp.ne.s32.totalorder %s1331_s27, %s987_s6  ;;  %s992_s7 = sshll.u32 %s1184_s4, 4  ;;  %s993_s7 = int_to_ptr.vmem [resolvable:$false] %s992_s7 }
  0x33   : > { %s994_s3 = scalar_lea.vmem %s993_s7, 3328  ;;  %p995_p6 = scmp.lt.s32.totalorder %s1331_s27, %s993_s7 }
  0x34   : > { %p990_p13 = pnand %p988_p11, %p974_p12  ;;  %p996_p1 = scmp.lt.s32.totalorder %s994_s3, %s987_s6 }
  0x36   : > { %p991_p2 = pneg %p990_p13  ;;  %p997_p3 = por %p996_p1, %p995_p6 }
  0x38   : > { %p998_p4 = pnand %p997_p3, %p991_p2 }
  0x3a   : > { %1001 = shalt.err (!%p998_p4)
}
  0x3b   : > { %s1185_s9 = smov 384   ;;  %s1653_s22 = smov 128  }
  0x3c   : > { %s1654_s26 = smov 8   ;;  %p678_p2 = scmp.ge.s32.totalorder %s1182_s25, 1 }
  0x3d   : > { %841 = dma.hbm_to_vmem [thread:$0]  (!%p1325_p10), %s1336_s28, 1664, %s1331_s27, %s1338_s30, %s1185_s9, %s1653_s22, %s1654_s26  }
  0x3e   : > { %p218_p6 = scmp.lt.s32.totalorder %s1182_s25, 7  ;;  %s669_s5 = sadd.s32 4294967295, %s1182_s25  }
  0x3f   : > { %s670_s6 = sadd.s32 4294967294, %s1182_s25   ;;  %p64_p12 = scmp.eq.s32.totalorder %s669_s5, 0 }
  0x40   : > { %p1370_p7 = pnand %p678_p2, %p218_p6  ;;  %s78_s4 = sadd.s32 1, %s1150_s17 }
  0x41   : > { %p85_p0 = scmp.ne.s32.totalorder %s1150_s17, %s1146_s16  ;;  %p1382_p8 = por %p64_p12, %p63_p5 }
  0x42   : > { %p91_p10 = scmp.ne.s32.totalorder %s1146_s16, %s1142_s15  ;;  %p1669_p9 = scmp.eq.s32.totalorder %s1296_s29, 0 }
  0x43   : > { %s1668_s11 = scalar_select %p1382_p8, 1, 0 }
  0x44   : > { %s1391_s27 = scalar_select %p1669_p9, %s1150_s17, %s78_s4  }
  0x45   : > { %p1670_p11 = scmp.eq.s32.totalorder %s1182_s25, 0  ;;  %p1399_p1 = por %p91_p10, %p64_p12 }
  0x46   : > { %p142_p3 = scmp.ne.s32.totalorder %s1138_s14, %s1134_s13  ;;  %p143_p5 = scmp.eq.s32.totalorder %s669_s5, 5 }
  0x47   : > { %p1395_p13 = por %p85_p0, %p1670_p11  ;;  %p148_p4 = scmp.ne.s32.totalorder %s1134_s13, %s1130_s12 }
  0x48   : > { %s1672_s30 = scalar_select %p1399_p1, 1, 0 }
  0x49   : > { %p149_p2 = scmp.eq.s32.totalorder %s670_s6, 5  ;;  %p1407_p6 = por %p143_p5, %p142_p3 }
  0x4a   : > { %s198_s18 = sand.u32 1, %s1150_s17   ;;  %s686_s3 = sshll.u32 %s1174_s23, 11 }
  0x4b   : > { %s1673_s15 = scalar_select %p1407_p6, 1, 0 }
  0x4c   : > { %p1412_p9 = por %p149_p2, %p148_p4  ;;  %s675_s7 = sshll.u32 %s198_s18, 7 }
  0x4d   : > { %s1420_s22 = scalar_lea.hbm %s1645_s1, %s686_s3  ;;  %s202_s5 = scalar_lea.vmem [#allocation6], %s675_s7 }
  0x4e   : > { %s1674_s29 = scalar_select %p1412_p9, 1, 0 }
  0x4f   : > { %s210_s6 = sshll.u32 %s202_s5, 4  ;;  %p1675_p12 = scmp.lt.s32.totalorder %s1182_s25, 6  ;;  %s1430_s6 = int_to_ptr.vmem [resolvable:$true] %s210_s6 }
  0x50   : > { %s1432_s0 = scalar_lea.sflag [#allocation7], %s198_s18  ;;  %s1002_s3 = scalar_lea.hbm %s1420_s22, 2048 }
  0x51   : > { %p1426_p0 = pnand %p1675_p12, %p1395_p13  ;;  %p1003_p10 = scmp.ne.s32.totalorder %s1420_s22, %s1002_s3 }
  0x52   : > { %s1007_s9 = scalar_lea.hbm %s1645_s1, 6144  ;;  %p1008_p13 = scmp.lt.u32.totalorder %s1420_s22, %s1645_s1 }
  0x53   : > { %p1004_p11 = pneg %p1426_p0  ;;  %p1009_p4 = scmp.lt.u32.totalorder %s1007_s9, %s1002_s3 }
  0x54   : > { %p1011_p12 = scmp.lt.u32.totalorder %s1002_s3, %s1420_s22 }
  0x55   : > { %p1005_p3 = pnand %p1004_p11, %p1003_p10  ;;  %p1010_p2 = por %p1009_p4, %p1008_p13 }
  0x57   : > { %p1006_p5 = pneg %p1005_p3  ;;  %p1012_p9 = por %p1011_p12, %p1010_p2 }
  0x59   : > { %p1013_p6 = pnand %p1012_p9, %p1006_p5 }
  0x5b   : > { %1016 = shalt.err (!%p1013_p6)
}
  0x5c   : > { %s1017_s18 = scalar_lea.vmem %s1430_s6, 2048  ;;  %s1188_s28 = smov [#allocation6]  }
  0x5d   : > { %p1018_p10 = scmp.ne.s32.totalorder %s1430_s6, %s1017_s18  ;;  %s1022_s7 = sshll.u32 %s1188_s28, 4  ;;  %s1023_s7 = int_to_ptr.vmem [resolvable:$false] %s1022_s7 }
  0x5e   : > { %s1024_s4 = scalar_lea.vmem %s1023_s7, 4096  ;;  %p1025_p8 = scmp.lt.s32.totalorder %s1430_s6, %s1023_s7 }
  0x5f   : > { %p1020_p3 = pnand %p1018_p10, %p1004_p11  ;;  %p1026_p13 = scmp.lt.s32.totalorder %s1024_s4, %s1017_s18 }
  0x61   : > { %p1021_p1 = pneg %p1020_p3  ;;  %p1027_p4 = por %p1026_p13, %p1025_p8 }
  0x63   : > { %p1028_p2 = pnand %p1027_p4, %p1021_p1 }
  0x65   : > { %1031 = shalt.err (!%p1028_p2)
}
  0x66   : > { %s1677_s3 = smov 8   ;;  %s1678_s9 = smov 128  }
  0x67   : > { %844 = dma.hbm_to_vmem [thread:$0]  (!%p1426_p0), %s1420_s22, 2048, %s1430_s6, %s1432_s0, %s1678_s9, %s1678_s9, %s1677_s3  }
  0x68   : > { %222 = sbr.rel (%p1370_p7) target bundleno = 433 (0x1b1), region = 32  ;;  %s224_s5 = sand.u32 (!%p1370_p7), 1, %s1158_s19  }
  0x69   : > { %s830_s28 = smul.u32 (!%p1370_p7), 104, %s224_s5  ;;  %s225_s18 = scalar_lea.sflag (!%p1370_p7), [#allocation4], %s224_s5 }
  0x6a   : > { %p1679_p8 = scmp.ne.s32.totalorder (!%p1370_p7), %s1668_s11, 0 }
  0x6b   : > { %s1466_s7 = scalar_lea.vmem (!%p1370_p7), [#allocation3], %s830_s28 }
  0x6f   : > { %1117 = dma.done.wait (%p1679_p8), %s225_s18, 1664  }
  0x70   : > { %1119 = vsyncadd (%p1679_p8), %s225_s18, 4294965632  ;;  %s233_s26 = sand.u32 1, %s1146_s16   ;;  %p1680_p7 = scmp.ne.s32.totalorder %s1672_s30, 0 }
  0x71   : > { %s679_s4 = sshll.u32 %s233_s26, 7  ;;  %s234_s0 = scalar_lea.sflag [#allocation7], %s233_s26 }
  0x72   : > { %s1473_s22 = scalar_lea.vmem [#allocation6], %s679_s4 }
  0x73   : > { %1121 = dma.done.wait (%p1680_p7), %s234_s0, 2048  }
  0x74   : > { %1123 = vsyncadd (%p1680_p7), %s234_s0, 4294965248  ;;  %s265_s10 = sand.u32 1, %s1134_s13   ;;  %p680_p1 = scmp.ne.s32.totalorder %s1166_s21, 0 }
  0x75   : > { %s831_s6 = smul.u32 104, %s265_s10  ;;  %v681_v0 = vld [vmem:[%s1646_s2] ss:$0 sm:$0xff] (!%p680_p1) }
  0x76   : > { %277 = sbr.rel (%p680_p1) target bundleno = 125 (0x7d), region = 44  ;;  %285 = vst [vmem:[#allocation2] sm:$0xff] (!%p680_p1), %v681_v0  ;;  %286 = vst [vmem:[#allocation2 + $0x8] sm:$0xff] (!%p680_p1), %v681_v0 }
  0x77   : > { %s1482_s3 = scalar_lea.vmem [#allocation8], %s831_s6  ;;  %287 = vst [vmem:[#allocation2 + $0x10] sm:$0xff] (!%p680_p1), %v681_v0  ;;  %288 = vst [vmem:[#allocation2 + $0x18] sm:$0xff] (!%p680_p1), %v681_v0 }
  0x78   : > { %289 = vst [vmem:[#allocation2 + $0x20] sm:$0xff] (!%p680_p1), %v681_v0  ;;  %290 = vst [vmem:[#allocation2 + $0x28] sm:$0xff] (!%p680_p1), %v681_v0 }
  0x79   : > { %291 = vst [vmem:[#allocation2 + $0x30] sm:$0xff] (!%p680_p1), %v681_v0  ;;  %292 = vst [vmem:[#allocation2 + $0x38] sm:$0xff] (!%p680_p1), %v681_v0 }
  0x7a   : > { %293 = vst [vmem:[#allocation2 + $0x40] sm:$0xff] (!%p680_p1), %v681_v0  ;;  %294 = vst [vmem:[#allocation2 + $0x48] sm:$0xff] (!%p680_p1), %v681_v0 }
  0x7b   : > { %295 = vst [vmem:[#allocation2 + $0x50] sm:$0xff] (!%p680_p1), %v681_v0  ;;  %296 = vst [vmem:[#allocation2 + $0x58] sm:$0xff] (!%p680_p1), %v681_v0 }
  0x7c   : > { %297 = vst [vmem:[#allocation2 + $0x60] sm:$0xff] (!%p680_p1), %v681_v0 }
  0x7d PF: > { %v324_v1 = vld [vmem:[%s1473_s22] sm:$0xff]  ;;  %v325_v2 = vld [vmem:[%s1473_s22 + $0x8] sm:$0xff]  ;;  %v326_v3 = vld [vmem:[%s1473_s22 + $0x10] sm:$0xff]  ;;  %v1189_v4 = vmov 0.0|0.0   ;;  %vm1190_vm0 = vmmov 0   ;;  %v1191_v7 = vmov 0.0  }
  0x7e   : > { %788 = vmatprep.subr.bf16.mxu0 %v1189_v4  ;;  %v789_v5 = vpack.c.bf16 %v325_v2, %v324_v1  ;;  %812 = vmatprep.subr.bf16.mxu1 %v1189_v4  ;;  %v327_v6 = vld [vmem:[%s1473_s22 + $0x18] sm:$0xff]  ;;  %v328_v9 = vld [vmem:[%s1473_s22 + $0x20] sm:$0xff]  ;;  %v329_v10 = vld [vmem:[%s1473_s22 + $0x28] sm:$0xff]  ;;  %p682_p6 = scmp.ne.s32.totalorder %s1166_s21, 2 }
  0x7f   : > { %749 = vmatprep.mubr.msk.f32.mxu0 %vm1190_vm0, %v1191_v7  ;;  %770 = vmatprep.mubr.msk.f32.mxu1 %vm1190_vm0, %v1191_v7  ;;  %v792_v8 = vpack.c.bf16 %v327_v6, %v326_v3  ;;  %v795_v11 = vpack.c.bf16 %v329_v10, %v328_v9  ;;  %v330_v12 = vld [vmem:[%s1473_s22 + $0x30] sm:$0xff]  ;;  %v331_v13 = vld [vmem:[%s1473_s22 + $0x38] sm:$0xff]  ;;  %v332_v15 = vld [vmem:[%s1473_s22 + $0x40] sm:$0xff] }
  0x80   : > { %790 = vmatpush3.bf16.msra.mxu0 %v789_v5  ;;  %820 = vmatpush3.bf16.msra.mxu1 %v789_v5  ;;  %v798_v14 = vpack.c.bf16 %v331_v13, %v330_v12  ;;  %v333_v16 = vld [vmem:[%s1473_s22 + $0x48] sm:$0xff]  ;;  %v334_v18 = vld [vmem:[%s1473_s22 + $0x50] sm:$0xff]  ;;  %v335_v19 = vld [vmem:[%s1473_s22 + $0x58] sm:$0xff] }
  0x81   : > { %791 = vmatprep.subr.bf16.mxu0 %v1189_v4  ;;  %813 = vmatprep.subr.bf16.mxu1 %v1189_v4  ;;  %v801_v17 = vpack.c.bf16 %v333_v16, %v332_v15  ;;  %v804_v20 = vpack.c.bf16 %v335_v19, %v334_v18  ;;  %v336_v21 = vld [vmem:[%s1473_s22 + $0x60] sm:$0xff]  ;;  %v337_v22 = vld [vmem:[%s1473_s22 + $0x68] sm:$0xff]  ;;  %v338_v24 = vld [vmem:[%s1473_s22 + $0x70] sm:$0xff] }
  0x82   : > { %v807_v23 = vpack.c.bf16 %v337_v22, %v336_v21  ;;  %v339_v25 = vld [vmem:[%s1473_s22 + $0x78] sm:$0xff]  ;;  %v318_v28 = vld [vmem:[%s1466_s7 + $0x38] sm:$0xff]  ;;  %v313_v31 = vld [vmem:[%s1466_s7 + $0x10] sm:$0xff] }
  0x83   : > { %v810_v26 = vpack.c.bf16 %v339_v25, %v338_v24  ;;  %v311_v27 = vld [vmem:[%s1466_s7] sm:$0xff]  ;;  %v312_v29 = vld [vmem:[%s1466_s7 + $0x8] sm:$0xff]  ;;  %v314_v33 = vld [vmem:[%s1466_s7 + $0x18] sm:$0xff] }
  0x84   : > { %793 = vmatpush3.bf16.msra.mxu0 %v792_v8  ;;  %821 = vmatpush3.bf16.msra.mxu1 %v792_v8  ;;  %v319_v30 = vld [vmem:[%s1466_s7 + $0x40] sm:$0xff]  ;;  %v320_v32 = vld [vmem:[%s1466_s7 + $0x48] sm:$0xff]  ;;  %v321_v34 = vld [vmem:[%s1466_s7 + $0x50] sm:$0xff] }
  0x85   : > { %794 = vmatprep.subr.bf16.mxu0 %v1189_v4  ;;  %814 = vmatprep.subr.bf16.mxu1 %v1189_v4  ;;  %v315_v35 = vld [vmem:[%s1466_s7 + $0x20] sm:$0xff]  ;;  %v322_v36 = vld [vmem:[%s1466_s7 + $0x58] sm:$0xff]  ;;  %v316_v37 = vld [vmem:[%s1466_s7 + $0x28] sm:$0xff] }
  0x86   : > { %v323_v38 = vld [vmem:[%s1466_s7 + $0x60] sm:$0xff]  ;;  %v317_v39 = vld [vmem:[%s1466_s7 + $0x30] sm:$0xff] }
  0x87   : > { %v298_v40 = vld [vmem:[#allocation2] sm:$0xff]  ;;  %v305_v41 = vld [vmem:[#allocation2 + $0x38] sm:$0xff]  ;;  %v299_v48 = vld [vmem:[#allocation2 + $0x8] sm:$0xff] }
  0x88   : > { %796 = vmatpush3.bf16.msra.mxu0 %v795_v11  ;;  %822 = vmatpush3.bf16.msra.mxu1 %v795_v11  ;;  %v306_v49 = vld [vmem:[#allocation2 + $0x40] sm:$0xff]  ;;  %v300_v56 = vld [vmem:[#allocation2 + $0x10] sm:$0xff]  ;;  %v307_v57 = vld [vmem:[#allocation2 + $0x48] sm:$0xff] }
  0x89   : > { %797 = vmatprep.subr.bf16.mxu0 %v1189_v4  ;;  %815 = vmatprep.subr.bf16.mxu1 %v1189_v4  ;;  %v301_v0 = vld [vmem:[#allocation2 + $0x18] sm:$0xff]  ;;  %v308_v1 = vld [vmem:[#allocation2 + $0x50] sm:$0xff]  ;;  %v302_v8 = vld [vmem:[#allocation2 + $0x20] sm:$0xff] }
  0x8a   : > { %v309_v9 = vld [vmem:[#allocation2 + $0x58] sm:$0xff]  ;;  %v303_v16 = vld [vmem:[#allocation2 + $0x28] sm:$0xff]  ;;  %v304_v24 = vld [vmem:[#allocation2 + $0x30] sm:$0xff] }
  0x8c   : > { %799 = vmatpush3.bf16.msra.mxu0 %v798_v14  ;;  %823 = vmatpush3.bf16.msra.mxu1 %v798_v14 }
  0x8d   : > { %800 = vmatprep.subr.bf16.mxu0 %v1189_v4  ;;  %816 = vmatprep.subr.bf16.mxu1 %v1189_v4 }
  0x90   : > { %802 = vmatpush3.bf16.msra.mxu0 %v801_v17  ;;  %824 = vmatpush3.bf16.msra.mxu1 %v801_v17  ;;  %v310_v17 = vld [vmem:[#allocation2 + $0x60] sm:$0xff] }
  0x91   : > { %803 = vmatprep.subr.bf16.mxu0 %v1189_v4  ;;  %817 = vmatprep.subr.bf16.mxu1 %v1189_v4 }
  0x94   : > { %805 = vmatpush3.bf16.msra.mxu0 %v804_v20  ;;  %825 = vmatpush3.bf16.msra.mxu1 %v804_v20 }
  0x95   : > { %806 = vmatprep.subr.bf16.mxu0 %v1189_v4  ;;  %818 = vmatprep.subr.bf16.mxu1 %v1189_v4 }
  0x98   : > { %808 = vmatpush3.bf16.msra.mxu0 %v807_v23  ;;  %826 = vmatpush3.bf16.msra.mxu1 %v807_v23 }
  0x99   : > { %809 = vmatprep.subr.bf16.mxu0 %v1189_v4  ;;  %819 = vmatprep.subr.bf16.mxu1 %v1189_v4 }
  0x9c   : > { %811 = vmatpush3.bf16.msra.mxu0 %v810_v26  ;;  %827 = vmatpush3.bf16.msra.mxu1 %v810_v26 }
  0x9f   : > { %750 = vmatmul.mubr.f32.vlgmr.msra.gmra.mrb[0].mxu0 %v311_v27  ;;  %771 = vmatmul.mubr.f32.vlgmr.msra.gmra.mrb[0].mxu1 %v318_v28 }
  0xa0   : > { %752 = vmatprep.mubr.msk.f32.mxu0 %vm1190_vm0, %v1191_v7  ;;  %773 = vmatprep.mubr.msk.f32.mxu1 %vm1190_vm0, %v1191_v7 }
  0xa3   : > { %753 = vmatmul.mubr.f32.gmra.mrb[2].mxu0 %v312_v29  ;;  %774 = vmatmul.mubr.f32.gmra.mrb[2].mxu1 %v319_v30 }
  0xa4   : > { %755 = vmatprep.mubr.msk.f32.mxu0 %vm1190_vm0, %v1191_v7  ;;  %776 = vmatprep.mubr.msk.f32.mxu1 %vm1190_vm0, %v1191_v7 }
  0xa7   : > { %756 = vmatmul.mubr.f32.gmra.mrb[4].mxu0 %v313_v31  ;;  %777 = vmatmul.mubr.f32.gmra.mrb[4].mxu1 %v320_v32 }
  0xa8   : > { %758 = vmatprep.mubr.msk.f32.mxu0 %vm1190_vm0, %v1191_v7  ;;  %779 = vmatprep.mubr.msk.f32.mxu1 %vm1190_vm0, %v1191_v7 }
  0xab   : > { %759 = vmatmul.mubr.f32.gmra.mrb[6].mxu0 %v314_v33  ;;  %780 = vmatmul.mubr.f32.gmra.mrb[6].mxu1 %v321_v34 }
  0xac   : > { %761 = vmatprep.mubr.msk.f32.mxu0 %vm1190_vm0, %v1191_v7  ;;  %782 = vmatprep.mubr.msk.f32.mxu1 %vm1190_vm0, %v1191_v7 }
  0xaf   : > { %762 = vmatmul.mubr.f32.gmra.mrb[8].mxu0 %v315_v35  ;;  %783 = vmatmul.mubr.f32.gmra.mrb[8].mxu1 %v322_v36 }
  0xb0   : > { %764 = vmatprep.mubr.msk.f32.mxu0 %vm1190_vm0, %v1191_v7  ;;  %785 = vmatprep.mubr.msk.f32.mxu1 %vm1190_vm0, %v1191_v7 }
  0xb3   : > { %765 = vmatmul.mubr.f32.gmra.mrb[10].mxu0 %v316_v37  ;;  %786 = vmatmul.mubr.f32.gmra.mrb[10].mxu1 %v323_v38 }
  0xb4   : > { %767 = vmatprep.mubr.msk.f32.mxu0 %vm1190_vm0, %v1191_v7 }
  0xb7   : > { %768 = vmatmul.mubr.f32.gmra.mrb[12].mxu0 %v317_v39 }
 0x172   : > { %v406_v42 = vpop.f32.mrb[0].mxu0  ;;  %v441_v43 = vpop.f32.mrb[0].mxu1 }
 0x173   : > { %v470_v44 = vadd.f32 %v406_v42, %v298_v40  ;;  %v751_v45 = vpop.f32.mrb[1].mxu0  ;;  %v477_v46 = vadd.f32 %v441_v43, %v305_v41  ;;  %v772_v47 = vpop.f32.mrb[1].mxu1 }
 0x175   : > { %483 = vst [vmem:[#allocation2] sm:$0xff] %v470_v44  ;;  %490 = vst [vmem:[#allocation2 + $0x38] sm:$0xff] %v477_v46 }
 0x176   : > { %v411_v50 = vpop.f32.mrb[2].mxu0  ;;  %v446_v51 = vpop.f32.mrb[2].mxu1 }
 0x177   : > { %v471_v52 = vadd.f32 %v411_v50, %v299_v48  ;;  %v754_v53 = vpop.f32.mrb[3].mxu0  ;;  %v478_v54 = vadd.f32 %v446_v51, %v306_v49  ;;  %v775_v55 = vpop.f32.mrb[3].mxu1 }
 0x179   : > { %484 = vst [vmem:[#allocation2 + $0x8] sm:$0xff] %v471_v52  ;;  %491 = vst [vmem:[#allocation2 + $0x40] sm:$0xff] %v478_v54 }
 0x17a   : > { %v416_v58 = vpop.f32.mrb[4].mxu0  ;;  %v451_v59 = vpop.f32.mrb[4].mxu1 }
 0x17b   : > { %v472_v60 = vadd.f32 %v416_v58, %v300_v56  ;;  %v757_v61 = vpop.f32.mrb[5].mxu0  ;;  %v479_v62 = vadd.f32 %v451_v59, %v307_v57  ;;  %v778_v63 = vpop.f32.mrb[5].mxu1 }
 0x17c   : > { %v500_v28 = vld [vmem:[#allocation2] sm:$0xff] (!%p682_p6)  ;;  %v507_v35 = vld [vmem:[#allocation2 + $0x38] sm:$0xff] (!%p682_p6) }
 0x17d   : > { %485 = vst [vmem:[#allocation2 + $0x10] sm:$0xff] %v472_v60  ;;  %492 = vst [vmem:[#allocation2 + $0x48] sm:$0xff] %v479_v62 }
 0x17e   : > { %v421_v2 = vpop.f32.mrb[6].mxu0  ;;  %v456_v3 = vpop.f32.mrb[6].mxu1  ;;  %513 = vst [vmem:[%s1482_s3] sm:$0xff] (!%p682_p6), %v500_v28  ;;  %520 = vst [vmem:[%s1482_s3 + $0x38] sm:$0xff] (!%p682_p6), %v507_v35 }
 0x17f   : > { %v473_v4 = vadd.f32 %v421_v2, %v301_v0  ;;  %v760_v5 = vpop.f32.mrb[7].mxu0  ;;  %v480_v6 = vadd.f32 %v456_v3, %v308_v1  ;;  %v781_v7 = vpop.f32.mrb[7].mxu1 }
 0x180   : > { %v501_v29 = vld [vmem:[#allocation2 + $0x8] sm:$0xff] (!%p682_p6)  ;;  %v508_v36 = vld [vmem:[#allocation2 + $0x40] sm:$0xff] (!%p682_p6) }
 0x181   : > { %486 = vst [vmem:[#allocation2 + $0x18] sm:$0xff] %v473_v4  ;;  %493 = vst [vmem:[#allocation2 + $0x50] sm:$0xff] %v480_v6 }
 0x182   : > { %v426_v10 = vpop.f32.mrb[8].mxu0  ;;  %v461_v11 = vpop.f32.mrb[8].mxu1  ;;  %514 = vst [vmem:[%s1482_s3 + $0x8] sm:$0xff] (!%p682_p6), %v501_v29  ;;  %521 = vst [vmem:[%s1482_s3 + $0x40] sm:$0xff] (!%p682_p6), %v508_v36 }
 0x183   : > { %v474_v12 = vadd.f32 %v426_v10, %v302_v8  ;;  %v763_v13 = vpop.f32.mrb[9].mxu0  ;;  %v481_v14 = vadd.f32 %v461_v11, %v309_v9  ;;  %v784_v15 = vpop.f32.mrb[9].mxu1 }
 0x184   : > { %v502_v30 = vld [vmem:[#allocation2 + $0x10] sm:$0xff] (!%p682_p6)  ;;  %v509_v37 = vld [vmem:[#allocation2 + $0x48] sm:$0xff] (!%p682_p6) }
 0x185   : > { %487 = vst [vmem:[#allocation2 + $0x20] sm:$0xff] %v474_v12  ;;  %494 = vst [vmem:[#allocation2 + $0x58] sm:$0xff] %v481_v14 }
 0x186   : > { %v431_v18 = vpop.f32.mrb[10].mxu0  ;;  %v466_v19 = vpop.f32.mrb[10].mxu1  ;;  %515 = vst [vmem:[%s1482_s3 + $0x10] sm:$0xff] (!%p682_p6), %v502_v30  ;;  %522 = vst [vmem:[%s1482_s3 + $0x48] sm:$0xff] (!%p682_p6), %v509_v37 }
 0x187   : > { %v475_v20 = vadd.f32 %v431_v18, %v303_v16  ;;  %v766_v21 = vpop.f32.mrb[11].mxu0  ;;  %v482_v22 = vadd.f32 %v466_v19, %v310_v17  ;;  %v787_v23 = vpop.f32.mrb[11].mxu1  ;;  %499 = sbr.rel (%p682_p6) target bundleno = 406 (0x196), region = 48 }
 0x188   : > { %v503_v31 = vld [vmem:[#allocation2 + $0x18] sm:$0xff] (!%p682_p6)  ;;  %v510_v38 = vld [vmem:[#allocation2 + $0x50] sm:$0xff] (!%p682_p6) }
 0x189   : > { %488 = vst [vmem:[#allocation2 + $0x28] sm:$0xff] %v475_v20  ;;  %495 = vst [vmem:[#allocation2 + $0x60] sm:$0xff] %v482_v22 }
 0x18a   : > { %v436_v25 = vpop.f32.mrb[12].mxu0  ;;  %516 = vst [vmem:[%s1482_s3 + $0x18] sm:$0xff] (!%p682_p6), %v503_v31  ;;  %523 = vst [vmem:[%s1482_s3 + $0x50] sm:$0xff] (!%p682_p6), %v510_v38 }
 0x18b   : > { %v476_v26 = vadd.f32 %v436_v25, %v304_v24  ;;  %v769_v27 = vpop.f32.mrb[13].mxu0 }
 0x18c   : > { %v504_v32 = vld [vmem:[#allocation2 + $0x20] sm:$0xff] (!%p682_p6)  ;;  %v511_v39 = vld [vmem:[#allocation2 + $0x58] sm:$0xff] (!%p682_p6) }
 0x18d   : > { %489 = vst [vmem:[#allocation2 + $0x30] sm:$0xff] %v476_v26  ;;  %517 = vst [vmem:[%s1482_s3 + $0x20] sm:$0xff] (!%p682_p6), %v504_v32 }
 0x18e   : > { %524 = vst [vmem:[%s1482_s3 + $0x58] sm:$0xff] %v511_v39 }
 0x190   : > { %v505_v33 = vld [vmem:[#allocation2 + $0x28] sm:$0xff]  ;;  %v512_v40 = vld [vmem:[#allocation2 + $0x60] sm:$0xff] }
 0x191   : > { %518 = vst [vmem:[%s1482_s3 + $0x28] sm:$0xff] %v505_v33  ;;  %525 = vst [vmem:[%s1482_s3 + $0x60] sm:$0xff] %v512_v40 }
 0x194   : > { %v506_v34 = vld [vmem:[#allocation2 + $0x30] sm:$0xff] }
 0x195   : > { %519 = vst [vmem:[%s1482_s3 + $0x30] sm:$0xff] %v506_v34 }
 0x196 PF: > { %s1681_s21 = sld [smem:[#allocation12_spill]]  ;;  %s541_s5 = sshll.u32 %s1482_s3, 4  ;;  %s1564_s5 = int_to_ptr.vmem [resolvable:$true] %s541_s5 }
 0x197   : > { %s1682_s7 = sld [smem:[#allocation17_spill]]  ;;  %s1568_s4 = scalar_lea.sflag [#allocation5], %s265_s10 }
 0x198   : > { %s1032_s0 = scalar_lea.vmem %s1564_s5, 1664  ;;  %p1683_p0 = scmp.ne.s32.totalorder %s1673_s15, 0 }
 0x199   : > { %p1033_p9 = scmp.ne.s32.totalorder %s1564_s5, %s1032_s0  ;;  %s1192_s22 = smov [#allocation8]  }
 0x19a   : > { %s1036_s6 = sshll.u32 %s1192_s22, 4  ;;  %s1037_s6 = int_to_ptr.vmem [resolvable:$false] %s1036_s6 }
 0x19b   : > { %p1034_p11 = pnand %p1033_p9, %p1683_p0  ;;  %s1038_s3 = scalar_lea.vmem %s1037_s6, 3328 }
 0x19c   : > { %s687_s30 = smul.u32 1664, %s1681_s21  ;;  %p1039_p12 = scmp.lt.s32.totalorder %s1564_s5, %s1037_s6 }
 0x19d   : > { %p1035_p5 = pneg %p1034_p11  ;;  %p1040_p10 = scmp.lt.s32.totalorder %s1038_s3, %s1032_s0 }
 0x19e   : > { %s1562_s26 = scalar_lea.hbm %s1682_s7, %s687_s30 }
 0x19f   : > { %p1041_p3 = por %p1040_p10, %p1039_p12 }
 0x1a1   : > { %p1042_p13 = pnand %p1041_p3, %p1035_p5 }
 0x1a3   : > { %1045 = shalt.err (!%p1042_p13)
}
 0x1a4   : > { %s1046_s10 = scalar_lea.hbm %s1562_s26, 1664  ;;  %s1050_s21 = scalar_lea.hbm %s1682_s7, 3328 }
 0x1a5   : > { %p1047_p4 = scmp.ne.s32.totalorder %s1562_s26, %s1046_s10  ;;  %p1051_p7 = scmp.lt.u32.totalorder %s1562_s26, %s1682_s7 }
 0x1a6   : > { %p1052_p1 = scmp.lt.u32.totalorder %s1050_s21, %s1046_s10  ;;  %p1054_p9 = scmp.lt.u32.totalorder %s1046_s10, %s1562_s26 }
 0x1a7   : > { %p1048_p2 = pnand %p1047_p4, %p1683_p0 }
 0x1a8   : > { %p1053_p6 = por %p1052_p1, %p1051_p7 }
 0x1a9   : > { %p1049_p8 = pneg %p1048_p2 }
 0x1aa   : > { %p1055_p11 = por %p1054_p9, %p1053_p6 }
 0x1ac   : > { %p1056_p5 = pnand %p1055_p11, %p1049_p8 }
 0x1ae   : > { %1059 = shalt.err (!%p1056_p5)
}
 0x1af   : > { %s1193_s18 = smov 128   ;;  %s1194_s0 = smov 8  }
 0x1b0   : > { %836 = dma.vmem_to_hbm [thread:$0]  (%p1683_p0), %s1564_s5, 1664, %s1562_s26, %s1568_s4, %s1193_s18, %s1193_s18, %s1194_s0  }
 0x1b1 PF: > { %p851_p12 = scmp.ge.s32.totalorder %s1182_s25, 2  ;;  %s556_s22 = sand.u32 1, %s1130_s12  }
 0x1b2   : > { %p1684_p10 = scmp.ne.s32.totalorder %s1674_s29, 0  ;;  %s557_s6 = scalar_lea.sflag [#allocation5], %s556_s22 }
 0x1b4   : > { %p846_p3 = pnand %p851_p12, %p1684_p10 }
 0x1b6   : > { %1125 = dma.done.wait (!%p846_p3), %s557_s6, 1664  }
 0x1b7   : > { %1127 = vsyncadd (!%p846_p3), %s557_s6, 4294965632  ;;  %s22_s25 = sadd.s32 1, %s1182_s25   ;;  %s1686_s5 = sld [smem:[#allocation15_spill]] }
 0x1b8   : > { %p1597_p13 = scmp.ge.s32.totalorder %s22_s25, 8   ;;  %s1687_s29 = sld [smem:[#allocation13_spill]] }
 0x1b9   : > { %s1688_s26 = sld [smem:[#allocation14_spill]]  ;;  %s1689_s12 = smov %s1134_s13 }
 0x1ba   : > { %s1690_s13 = smov %s1138_s14  ;;  %s1691_s14 = smov %s1316_s8 }
 0x1bb   : > { %s1692_s15 = smov %s1146_s16  ;;  %s1693_s16 = smov %s1150_s17 }
 0x1bc   : > { %s1694_s17 = smov %s1391_s27  ;;  %s1695_s18 = smov %s1158_s19 }
 0x1bd   : > { %s1696_s19 = smov %s1162_s20  ;;  %s1697_s20 = smov %s1686_s5 }
 0x1be   : > { %s1698_s21 = smov %s1174_s23  ;;  %s1699_s22 = smov %s1178_s24 }
 0x1bf   : > { %s1700_s23 = smov %s1687_s29  ;;  %s1701_s24 = smov %s1688_s26 }
 0x1c0   :  { %21 = sbr.rel (!%p1597_p13) target bundleno = 15 (0xf), region = 101 }
 0x1c7   :  { %562 = vsyncpa [#allocation4], 1 }
 0x1c8   :  { %564 = vsyncpa [#allocation4 + $0x1], 1 }
 0x1c9   :  { %565 = vsyncpa [#allocation7], 1 }
 0x1ca   :  { %567 = vsyncpa [#allocation7 + $0x1], 1 }
 0x1cb   :  { %568 = vsyncpa [#allocation5], 1 }
 0x1cc   :  { %570 = vsyncpa [#allocation5 + $0x1], 1 }

</bundles_post_ra>
